<compile_context>
chip_gen: v7x
topology: tpu7x:2x2x1
jax: 0.10.0
libtpu: 0.0.40
codegen_flags: <defaults>
</compile_context>

<pallas_src>
import jax
import jax.numpy as jnp
from jax import lax
from jax.experimental import pallas as pl
from jax.experimental.pallas import tpu as pltpu

LANES = 128
NEG_INVALID = 1e9                 # "negated hinge error" written for ignored pixels
TARGET_BLOCK_ELEMS = 256 * 1024   # ~1 MiB f32 per pred block in kernel 1
MAX_TR = 256                      # max sorted rows (of 128 lanes) per grid step in kernel 2


def _round_up(a, b):
    return (a + b - 1) // b * b


# ---------------------------------------------------------------------------
# Kernel 1: masked BCE-with-logits partials + Lovasz hinge errors (streaming)
# ---------------------------------------------------------------------------
def _bce_err_kernel(pred_ref, tgt_ref, msk_ref,
                    nerr_ref, gt_ref, bce_ref, cnt_ref, pos_ref):
    x = pred_ref[...]                     # (1, C, T)
    t = tgt_ref[...]                      # (1, C, T)
    m = msk_ref[...]                      # (1, 1, T) -> broadcast over C
    valid = jnp.logical_and(m != 0.0, t != 255.0)

    # numerically stable BCE-with-logits, accumulated only over valid pixels
    bce = jnp.maximum(x, 0.0) - x * t + jnp.log1p(jnp.exp(-jnp.abs(x)))
    bce_ref[...] = jnp.sum(jnp.where(valid, bce, 0.0)).reshape(1, 1, 1, 1)
    cnt_ref[...] = jnp.sum(valid.astype(jnp.float32)).reshape(1, 1, 1, 1)
    pos_ref[...] = jnp.sum(jnp.where(valid, t, 0.0)).reshape(1, 1, 1, 1)

    # Lovasz hinge errors, stored negated so an ascending key/payload sort
    # yields descending errors. Ignored pixels get +1e9 -> sort to the end,
    # relu(-1e9) = 0 kills their contribution in kernel 2.
    signs = 2.0 * t - 1.0
    nerr_ref[...] = jnp.where(valid, x * signs - 1.0, NEG_INVALID)
    gt_ref[...] = jnp.where(valid, t, 0.0)


def _bce_and_errors(pred3, tgt3, msk3, tile_hw):
    N, C, HWp = pred3.shape
    g1 = HWp // tile_hw
    io_spec = pl.BlockSpec((1, C, tile_hw), lambda n, r: (n, 0, r))
    m_spec = pl.BlockSpec((1, 1, tile_hw), lambda n, r: (n, 0, r))
    p_spec = pl.BlockSpec((1, 1, 1, 1), lambda n, r: (n, r, 0, 0))
    out_shape = (
        jax.ShapeDtypeStruct((N, C, HWp), jnp.float32),    # negated hinge errors
        jax.ShapeDtypeStruct((N, C, HWp), jnp.float32),    # masked labels
        jax.ShapeDtypeStruct((N, g1, 1, 1), jnp.float32),  # partial BCE sums
        jax.ShapeDtypeStruct((N, g1, 1, 1), jnp.float32),  # partial valid counts
        jax.ShapeDtypeStruct((N, g1, 1, 1), jnp.float32),  # partial positive counts
    )
    return pl.pallas_call(
        _bce_err_kernel,
        out_shape=out_shape,
        grid_spec=pltpu.PrefetchScalarGridSpec(
            num_scalar_prefetch=0,
            grid=(N, g1),
            in_specs=[io_spec, io_spec, m_spec],
            out_specs=(io_spec, io_spec, p_spec, p_spec, p_spec),
        ),
        compiler_params=pltpu.CompilerParams(
            dimension_semantics=("parallel", "parallel")),
    )(pred3, tgt3, msk3)


# ---------------------------------------------------------------------------
# Kernel 2: blocked Lovasz hinge over the sorted (rows, 128) stream
# ---------------------------------------------------------------------------
def _lovasz_kernel(gts_ref, nerr_ref, g_ref, out_ref, u_ref, l_ref, carry_ref):
    step = pl.program_id(0)
    TR, B = g_ref.shape

    @pl.when(step == 0)
    def _():
        r = lax.broadcasted_iota(jnp.int32, (B, B), 0)
        c = lax.broadcasted_iota(jnp.int32, (B, B), 1)
        u_ref[...] = (r <= c).astype(jnp.float32)        # inclusive within-row cumsum
        rr = lax.broadcasted_iota(jnp.int32, (TR, TR), 0)
        cc = lax.broadcasted_iota(jnp.int32, (TR, TR), 1)
        l_ref[...] = (cc < rr).astype(jnp.float32)        # strictly-lower: exclusive row prefix
        carry_ref[...] = jnp.zeros_like(carry_ref)
        out_ref[...] = jnp.zeros_like(out_ref)

    g = g_ref[...]                       # (TR, B) 0/1 labels, globally sorted order
    e = -nerr_ref[...]                   # hinge errors, descending
    gts = gts_ref[...]                   # (1, 1) total number of positives

    # global inclusive cumsum of the labels:
    #   within-row part via MXU, cross-row part via small triangular matmul,
    #   cross-tile part via the scalar carry.
    rowcs = jnp.dot(g, u_ref[...], preferred_element_type=jnp.float32)
    row_tot = jnp.sum(g, axis=1, keepdims=True)                     # (TR, 1)
    ep = jnp.dot(l_ref[...], jnp.broadcast_to(row_tot, (TR, B)),
                 preferred_element_type=jnp.float32)
    csg = carry_ref[...] + ep + rowcs

    # Integer positions (exact in f32 for P < 2^24, fine for these workloads).
    pos = ((step * TR + lax.broadcasted_iota(jnp.int32, (TR, B), 0)) * B
           + lax.broadcasted_iota(jnp.int32, (TR, B), 1))
    posf = pos.astype(jnp.float32)

    # jaccard[i];   cumsum(1-g)[i] == (i+1) - cumsum(g)[i]   (exact integers in f32)
    jac = 1.0 - (gts - csg) / (gts + (posf + 1.0) - csg)
    # jaccard[i-1] recomputed from csg[i] - g[i]; only undefined (0/0) at i == 0
    csg_p = csg - g
    jac_p = 1.0 - (gts - csg_p) / (gts + posf - csg_p)
    grad = jac - jnp.where(pos == 0, 0.0, jac_p)

    out_ref[...] += jnp.sum(jnp.maximum(e, 0.0) * grad).reshape(1, 1)
    carry_ref[...] += jnp.sum(row_tot).reshape(1, 1)


def _lovasz_hinge(gts, nerr2, g2, tr):
    R2, B = nerr2.shape
    tile = pl.BlockSpec((tr, B), lambda i: (i, 0))
    scalar = pl.BlockSpec((1, 1), lambda i: (0, 0))
    return pl.pallas_call(
        _lovasz_kernel,
        out_shape=jax.ShapeDtypeStruct((1, 1), jnp.float32),
        grid_spec=pltpu.PrefetchScalarGridSpec(
            num_scalar_prefetch=0,
            grid=(R2 // tr,),
            in_specs=[scalar, tile, tile],
            out_specs=scalar,
            scratch_shapes=[pltpu.VMEM((B, B), jnp.float32),
                            pltpu.VMEM((tr, tr), jnp.float32),
                            pltpu.VMEM((1, 1), jnp.float32)],
        ),
        compiler_params=pltpu.CompilerParams(
            dimension_semantics=("arbitrary",)),
    )(gts, nerr2, g2)


# ---------------------------------------------------------------------------
# Wrapper: Hybird.forward
# ---------------------------------------------------------------------------
def hybird_loss(pred, target, mask, l1=1.0):
    N, C, H, W = pred.shape
    HW = H * W

    # ---- stage 1: masked BCE + hinge errors over (N, C, HWp) blocks ----------
    tile_hw = max(LANES, (TARGET_BLOCK_ELEMS // max(C, 1)) // LANES * LANES)
    tile_hw = min(tile_hw, _round_up(HW, LANES))
    HWp = _round_up(HW, tile_hw)

    pred3 = pred.reshape(N, C, HW).astype(jnp.float32)
    tgt3 = target.reshape(N, C, HW).astype(jnp.float32)
    msk3 = mask.reshape(N, 1, HW).astype(jnp.float32)
    if HWp != HW:   # only a lane-remainder pad; skipped entirely when aligned
        widths = ((0, 0), (0, 0), (0, HWp - HW))
        pred3 = jnp.pad(pred3, widths)
        tgt3 = jnp.pad(tgt3, widths)
        msk3 = jnp.pad(msk3, widths)     # mask==0 -> padded pixels are ignored

    nerr, gt_m, bce_p, cnt_p, pos_p = _bce_and_errors(pred3, tgt3, msk3, tile_hw)
    bce = jnp.sum(bce_p) / jnp.maximum(jnp.sum(cnt_p), 1.0)
    gts = jnp.sum(pos_p).reshape(1, 1)

    # ---- stage 2: single key/payload sort (descending hinge errors) ----------
    # TODO(synk): the global sort has no clean Pallas equivalent; it is done
    # with one fused lax.sort (negated-error keys, labels as payload).
    nerr_s, gt_s = lax.sort((nerr.reshape(-1), gt_m.reshape(-1)),
                            dimension=0, num_keys=1)

    # ---- stage 3: blocked Lovasz hinge over the sorted stream -----------------
    P = nerr_s.shape[0]                  # multiple of 128 by construction
    R = P // LANES
    tr = min(MAX_TR, _round_up(R, 8))    # size tiles to the problem: no huge pad
    R2 = _round_up(R, tr)
    if R2 * LANES != P:
        extra = R2 * LANES - P
        nerr_s = jnp.pad(nerr_s, (0, extra), constant_values=NEG_INVALID)
        gt_s = jnp.pad(gt_s, (0, extra), constant_values=0.0)
    nerr2 = nerr_s.reshape(R2, LANES)
    gt2 = gt_s.reshape(R2, LANES)

    lovasz = _lovasz_hinge(gts, nerr2, gt2, tr)[0, 0]
    return (bce + l1 * lovasz) / (1.0 + l1)


# ---------------------------------------------------------------------------
# Pure-JAX reference (mirrors the PyTorch semantics) for a correctness check
# ---------------------------------------------------------------------------
def hybird_ref(pred, target, mask, l1=1.0):
    mask_e = jnp.broadcast_to(mask[:, None, :, :], pred.shape)
    x = pred.astype(jnp.float32)
    tgt = jnp.where(mask_e == 0, 255.0, target.astype(jnp.float32))
    valid = tgt != 255.0
    t = jnp.where(valid, tgt, 0.0)

    bce = jnp.maximum(x, 0.0) - x * t + jnp.log1p(jnp.exp(-jnp.abs(x)))
    bce = jnp.sum(jnp.where(valid, bce, 0.0)) / jnp.maximum(
        jnp.sum(valid.astype(jnp.float32)), 1.0)

    logits = x.reshape(-1)
    labels = t.reshape(-1)
    v = valid.reshape(-1)
    signs = 2.0 * labels - 1.0
    errors = jnp.where(v, 1.0 - logits * signs, -1e9)
    gt = jnp.where(v, labels, 0.0)
    order = jnp.argsort(-errors)
    e_s = errors[order]
    g_s = gt[order]
    gts = jnp.sum(g_s)
    inter = gts - jnp.cumsum(g_s)
    uni = gts + jnp.cumsum(1.0 - g_s)
    jac = 1.0 - inter / uni
    grad = jac - jnp.concatenate([jnp.zeros((1,), jnp.float32), jac[:-1]])
    lov = jnp.sum(jnp.maximum(e_s, 0.0) * grad)
    return (bce + l1 * lov) / (1.0 + l1)


if __name__ == "__main__":
    def run_case(key, N, C, H, W):
        k1, k2, k3 = jax.random.split(key, 3)
        pred = jax.random.normal(k1, (N, C, H, W), dtype=jnp.float32)
        target = (jax.random.uniform(k2, (N, C, H, W)) > 0.5).astype(jnp.float32)
        mask = (jax.random.uniform(k3, (N, H, W)) > 0.2).astype(jnp.float32)

        loss = jax.block_until_ready(hybird_loss(pred, target, mask, l1=1.0))
        ref = jax.block_until_ready(hybird_ref(pred, target, mask, l1=1.0))
        assert abs(float(loss) - float(ref)) < 1e-4 * max(1.0, abs(float(ref))), (
            (N, C, H, W), float(loss), float(ref))

    run_case(jax.random.PRNGKey(0), 2, 4, 16, 16)   # aligned spatial dims
    run_case(jax.random.PRNGKey(1), 1, 3, 9, 11)    # ragged spatial dims / odd C
    print("KERNEL_OK")
</pallas_src>

<mosaic_0001>
module attributes {stable_mosaic.version = 11 : i64} {
  func.func @_bce_err_kernel(%arg0: i32, %arg1: i32, %arg2: memref<1x4x256xf32, #tpu.memory_space<vmem>>, %arg3: memref<1x4x256xf32, #tpu.memory_space<vmem>>, %arg4: memref<1x1x256xf32, #tpu.memory_space<vmem>>, %arg5: memref<1x4x256xf32, #tpu.memory_space<vmem>>, %arg6: memref<1x4x256xf32, #tpu.memory_space<vmem>>, %arg7: memref<1x1x1x1xf32, #tpu.memory_space<vmem>>, %arg8: memref<1x1x1x1xf32, #tpu.memory_space<vmem>>, %arg9: memref<1x1x1x1xf32, #tpu.memory_space<vmem>>) attributes {dimension_semantics = [#tpu.dimension_semantics<parallel>, #tpu.dimension_semantics<parallel>], iteration_bounds = array<i64: 2, 1>, scalar_prefetch = 0 : i64, scratch_operands = 0 : i64, tpu.core_type = #tpu.core_type<tc>, window_params = [{transform_indices = @transform_0, window_bounds = array<i64: 1, 4, 256>}, {transform_indices = @transform_1, window_bounds = array<i64: 1, 4, 256>}, {transform_indices = @transform_2, window_bounds = array<i64: 1, 1, 256>}, {transform_indices = @transform_3, window_bounds = array<i64: 1, 4, 256>}, {transform_indices = @transform_4, window_bounds = array<i64: 1, 4, 256>}, {transform_indices = @transform_5, window_bounds = array<i64: 1, 1, 1, 1>}, {transform_indices = @transform_6, window_bounds = array<i64: 1, 1, 1, 1>}, {transform_indices = @transform_7, window_bounds = array<i64: 1, 1, 1, 1>}]} {
    %c0 = arith.constant 0 : index
    %c0_0 = arith.constant 0 : index
    %c0_1 = arith.constant 0 : index
    %0 = vector.load %arg2[%c0, %c0_0, %c0_1] : memref<1x4x256xf32, #tpu.memory_space<vmem>>, vector<1x4x256xf32>
    %c0_2 = arith.constant 0 : index
    %c0_3 = arith.constant 0 : index
    %c0_4 = arith.constant 0 : index
    %1 = vector.load %arg3[%c0_2, %c0_3, %c0_4] : memref<1x4x256xf32, #tpu.memory_space<vmem>>, vector<1x4x256xf32>
    %c0_5 = arith.constant 0 : index
    %c0_6 = arith.constant 0 : index
    %c0_7 = arith.constant 0 : index
    %2 = vector.load %arg4[%c0_5, %c0_6, %c0_7] : memref<1x1x256xf32, #tpu.memory_space<vmem>>, vector<1x1x256xf32>
    %cst = arith.constant 0.000000e+00 : f32
    %3 = vector.broadcast %cst : f32 to vector<1x1x256xf32>
    %4 = arith.cmpf one, %2, %3 : vector<1x1x256xf32>
    %cst_8 = arith.constant 2.550000e+02 : f32
    %5 = vector.broadcast %cst_8 : f32 to vector<1x4x256xf32>
    %6 = arith.cmpf one, %1, %5 : vector<1x4x256xf32>
    %7 = vector.broadcast %4 : vector<1x1x256xi1> to vector<1x4x256xi1>
    %8 = arith.andi %7, %6 : vector<1x4x256xi1>
    %cst_9 = arith.constant 0.000000e+00 : f32
    %9 = vector.broadcast %cst_9 : f32 to vector<1x4x256xf32>
    %10 = arith.maximumf %0, %9 : vector<1x4x256xf32>
    %11 = arith.mulf %0, %1 : vector<1x4x256xf32>
    %12 = arith.subf %10, %11 : vector<1x4x256xf32>
    %13 = math.absf %0 : vector<1x4x256xf32>
    %cst_10 = arith.constant 0.000000e+00 : f32
    %14 = vector.broadcast %cst_10 : f32 to vector<1x4x256xf32>
    %15 = arith.subf %14, %13 : vector<1x4x256xf32>
    %16 = math.exp %15 : vector<1x4x256xf32>
    %17 = math.log1p %16 : vector<1x4x256xf32>
    %18 = arith.addf %12, %17 : vector<1x4x256xf32>
    %cst_11 = arith.constant 0.000000e+00 : f32
    %19 = vector.broadcast %cst_11 : f32 to vector<1x4x256xf32>
    %20 = arith.select %8, %18, %19 : vector<1x4x256xi1>, vector<1x4x256xf32>
    %21 = vector.shape_cast %20 : vector<1x4x256xf32> to vector<1x1x4x256xf32>
    %cst_12 = arith.constant dense<0.000000e+00> : vector<1xf32>
    %22 = vector.multi_reduction <add>, %21, %cst_12 [1, 2, 3] : vector<1x1x4x256xf32> to vector<1xf32>
    %23 = vector.shape_cast %22 : vector<1xf32> to vector<1x1x1x1xf32>
    %24 = vector.extract %23[0, 0, 0, 0] : f32 from vector<1x1x1x1xf32>
    %25 = vector.broadcast %24 : f32 to vector<1x1x1x1xf32>
    %c0_13 = arith.constant 0 : index
    %c0_14 = arith.constant 0 : index
    %c0_15 = arith.constant 0 : index
    %c0_16 = arith.constant 0 : index
    %26 = vector.load %arg7[%c0_13, %c0_14, %c0_15, %c0_16] : memref<1x1x1x1xf32, #tpu.memory_space<vmem>>, vector<1x1x1x1xf32>
    tpu.vector_store %arg7[%c0_13, %c0_14, %c0_15, %c0_16], %25 {strides = array<i32>} : memref<1x1x1x1xf32, #tpu.memory_space<vmem>>, vector<1x1x1x1xf32>,
    %27 = arith.extui %8 : vector<1x4x256xi1> to vector<1x4x256xi32>
    %28 = arith.sitofp %27 : vector<1x4x256xi32> to vector<1x4x256xf32>
    %29 = vector.shape_cast %28 : vector<1x4x256xf32> to vector<1x1x4x256xf32>
    %cst_17 = arith.constant dense<0.000000e+00> : vector<1xf32>
    %30 = vector.multi_reduction <add>, %29, %cst_17 [1, 2, 3] : vector<1x1x4x256xf32> to vector<1xf32>
    %31 = vector.shape_cast %30 : vector<1xf32> to vector<1x1x1x1xf32>
    %32 = vector.extract %31[0, 0, 0, 0] : f32 from vector<1x1x1x1xf32>
    %33 = vector.broadcast %32 : f32 to vector<1x1x1x1xf32>
    %c0_18 = arith.constant 0 : index
    %c0_19 = arith.constant 0 : index
    %c0_20 = arith.constant 0 : index
    %c0_21 = arith.constant 0 : index
    %34 = vector.load %arg8[%c0_18, %c0_19, %c0_20, %c0_21] : memref<1x1x1x1xf32, #tpu.memory_space<vmem>>, vector<1x1x1x1xf32>
    tpu.vector_store %arg8[%c0_18, %c0_19, %c0_20, %c0_21], %33 {strides = array<i32>} : memref<1x1x1x1xf32, #tpu.memory_space<vmem>>, vector<1x1x1x1xf32>,
    %cst_22 = arith.constant 0.000000e+00 : f32
    %35 = vector.broadcast %cst_22 : f32 to vector<1x4x256xf32>
    %36 = arith.select %8, %1, %35 : vector<1x4x256xi1>, vector<1x4x256xf32>
    %37 = vector.shape_cast %36 : vector<1x4x256xf32> to vector<1x1x4x256xf32>
    %cst_23 = arith.constant dense<0.000000e+00> : vector<1xf32>
    %38 = vector.multi_reduction <add>, %37, %cst_23 [1, 2, 3] : vector<1x1x4x256xf32> to vector<1xf32>
    %39 = vector.shape_cast %38 : vector<1xf32> to vector<1x1x1x1xf32>
    %40 = vector.extract %39[0, 0, 0, 0] : f32 from vector<1x1x1x1xf32>
    %41 = vector.broadcast %40 : f32 to vector<1x1x1x1xf32>
    %c0_24 = arith.constant 0 : index
    %c0_25 = arith.constant 0 : index
    %c0_26 = arith.constant 0 : index
    %c0_27 = arith.constant 0 : index
    %42 = vector.load %arg9[%c0_24, %c0_25, %c0_26, %c0_27] : memref<1x1x1x1xf32, #tpu.memory_space<vmem>>, vector<1x1x1x1xf32>
    tpu.vector_store %arg9[%c0_24, %c0_25, %c0_26, %c0_27], %41 {strides = array<i32>} : memref<1x1x1x1xf32, #tpu.memory_space<vmem>>, vector<1x1x1x1xf32>,
    %cst_28 = arith.constant 2.000000e+00 : f32
    %43 = vector.broadcast %cst_28 : f32 to vector<1x4x256xf32>
    %44 = arith.mulf %43, %1 : vector<1x4x256xf32>
    %cst_29 = arith.constant 1.000000e+00 : f32
    %45 = vector.broadcast %cst_29 : f32 to vector<1x4x256xf32>
    %46 = arith.subf %44, %45 : vector<1x4x256xf32>
    %47 = arith.mulf %0, %46 : vector<1x4x256xf32>
    %cst_30 = arith.constant 1.000000e+00 : f32
    %48 = vector.broadcast %cst_30 : f32 to vector<1x4x256xf32>
    %49 = arith.subf %47, %48 : vector<1x4x256xf32>
    %cst_31 = arith.constant 1.000000e+09 : f32
    %50 = vector.broadcast %cst_31 : f32 to vector<1x4x256xf32>
    %51 = arith.select %8, %49, %50 : vector<1x4x256xi1>, vector<1x4x256xf32>
    %c0_32 = arith.constant 0 : index
    %c0_33 = arith.constant 0 : index
    %c0_34 = arith.constant 0 : index
    %52 = vector.load %arg5[%c0_32, %c0_33, %c0_34] : memref<1x4x256xf32, #tpu.memory_space<vmem>>, vector<1x4x256xf32>
    tpu.vector_store %arg5[%c0_32, %c0_33, %c0_34], %51 {strides = array<i32>} : memref<1x4x256xf32, #tpu.memory_space<vmem>>, vector<1x4x256xf32>,
    %cst_35 = arith.constant 0.000000e+00 : f32
    %53 = vector.broadcast %cst_35 : f32 to vector<1x4x256xf32>
    %54 = arith.select %8, %1, %53 : vector<1x4x256xi1>, vector<1x4x256xf32>
    %c0_36 = arith.constant 0 : index
    %c0_37 = arith.constant 0 : index
    %c0_38 = arith.constant 0 : index
    %55 = vector.load %arg6[%c0_36, %c0_37, %c0_38] : memref<1x4x256xf32, #tpu.memory_space<vmem>>, vector<1x4x256xf32>
    tpu.vector_store %arg6[%c0_36, %c0_37, %c0_38], %54 {strides = array<i32>} : memref<1x4x256xf32, #tpu.memory_space<vmem>>, vector<1x4x256xf32>,
    return
  }
  func.func @transform_0(%arg0: i32, %arg1: i32) -> (i32, i32, i32) {
    %c0_i32 = arith.constant 0 : i32
    %c0_i32_0 = arith.constant 0 : i32
    return %arg0, %c0_i32, %arg1 : i32, i32, i32
  }
  func.func @transform_1(%arg0: i32, %arg1: i32) -> (i32, i32, i32) {
    %c0_i32 = arith.constant 0 : i32
    %c0_i32_0 = arith.constant 0 : i32
    return %arg0, %c0_i32, %arg1 : i32, i32, i32
  }
  func.func @transform_2(%arg0: i32, %arg1: i32) -> (i32, i32, i32) {
    %c0_i32 = arith.constant 0 : i32
    %c0_i32_0 = arith.constant 0 : i32
    return %arg0, %c0_i32, %arg1 : i32, i32, i32
  }
  func.func @transform_3(%arg0: i32, %arg1: i32) -> (i32, i32, i32) {
    %c0_i32 = arith.constant 0 : i32
    %c0_i32_0 = arith.constant 0 : i32
    return %arg0, %c0_i32, %arg1 : i32, i32, i32
  }
  func.func @transform_4(%arg0: i32, %arg1: i32) -> (i32, i32, i32) {
    %c0_i32 = arith.constant 0 : i32
    %c0_i32_0 = arith.constant 0 : i32
    return %arg0, %c0_i32, %arg1 : i32, i32, i32
  }
  func.func @transform_5(%arg0: i32, %arg1: i32) -> (i32, i32, i32, i32) {
    %c0_i32 = arith.constant 0 : i32
    %c0_i32_0 = arith.constant 0 : i32
    %c0_i32_1 = arith.constant 0 : i32
    return %arg0, %arg1, %c0_i32, %c0_i32_0 : i32, i32, i32, i32
  }
  func.func @transform_6(%arg0: i32, %arg1: i32) -> (i32, i32, i32, i32) {
    %c0_i32 = arith.constant 0 : i32
    %c0_i32_0 = arith.constant 0 : i32
    %c0_i32_1 = arith.constant 0 : i32
    return %arg0, %arg1, %c0_i32, %c0_i32_0 : i32, i32, i32, i32
  }
  func.func @transform_7(%arg0: i32, %arg1: i32) -> (i32, i32, i32, i32) {
    %c0_i32 = arith.constant 0 : i32
    %c0_i32_0 = arith.constant 0 : i32
    %c0_i32_1 = arith.constant 0 : i32
    return %arg0, %arg1, %c0_i32, %c0_i32_0 : i32, i32, i32, i32
  }
}

</mosaic_0001>

<bundles_post_ra>
// kernel: tpu_custom_call.1
= control target key start
LH: loop header
LB: loop body
LE: loop exit
PB: predicated region body
PF: predicated region fallthrough
CT: control target
= control target key end

     0   :  { %s1517_s0 = inlined_call_operand.hbm [shape: f32[2,4,256], index: 0, kind: input, shape index: {}]   ;;  %s1518_s1 = inlined_call_operand.hbm [shape: f32[2,4,256], index: 1, kind: input, shape index: {}]   ;;  %s1519_s2 = inlined_call_operand.vmem [shape: f32[2,1,256], index: 2, kind: input, shape index: {}]   ;;  %s1520_s3 = inlined_call_operand.hbm [shape: f32[2,4,256], index: 3, kind: output, shape index: {0}]   ;;  %s1521_s4 = inlined_call_operand.hbm [shape: f32[2,4,256], index: 4, kind: output, shape index: {1}]   ;;  %s1522_s5 = inlined_call_operand.vmem [shape: f32[2,1,1,1], index: 5, kind: output, shape index: {2}]   ;;  %s1523_s6 = inlined_call_operand.vmem [shape: f32[2,1,1,1], index: 6, kind: output, shape index: {3}]   ;;  %s1524_s7 = inlined_call_operand.vmem [shape: f32[2,1,1,1], index: 7, kind: output, shape index: {4}]  }
   0x1   :  { %1531 = sst [smem:[#allocation15_spill]] %s1517_s0 }
   0x2   :  { %1532 = sst [smem:[#allocation16_spill]] %s1518_s1 }
   0x3   :  { %1533 = sst [smem:[#allocation17_spill]] %s1519_s2 }
   0x4   :  { %13 = vsyncpa [#allocation3], 0 }
   0x5   :  { %15 = vsyncpa [#allocation3 + $0x1], 0 }
   0x6   :  { %16 = vsyncpa [#allocation6], 0 }
   0x7   :  { %18 = vsyncpa [#allocation6 + $0x1], 0 }
   0x8   :  { %19 = vsyncpa [#allocation4], 0 }
   0x9   :  { %21 = vsyncpa [#allocation4 + $0x1], 0 }
   0xa   :  { %22 = vsyncpa [#allocation9], 0 }
   0xb   :  { %24 = vsyncpa [#allocation9 + $0x1], 0  ;;  %s1214_s24 = smov 0   ;;  %s1216_s25 = smov 0  }
   0xc   :  { %s1218_s26 = smov 0   ;;  %s1220_s27 = smov 0  }
   0xd   :  { %s1222_s28 = smov 0   ;;  %s1224_s29 = smov 0  }
   0xe LB: > { %s871_s30 = sadd.s32 4294967295, %s1166_s29   ;;  %s872_s8 = sadd.s32 4294967294, %s1166_s29   ;;  %s1166_s29 = sphi %s1224_s29, %s30_s29   ;;  %s1162_s28 = sphi %s1222_s28, %s1563_s28   ;;  %s1158_s27 = sphi %s1220_s27, %s1562_s27   ;;  %s1154_s26 = sphi %s1218_s26, %s1561_s26   ;;  %s1150_s25 = sphi %s1216_s25, %s1560_s25   ;;  %s1146_s24 = sphi %s1214_s24, %s1559_s24  }
   0xf   : > { %s42_s9 = sadd.s32 1, %s1162_s28  ;;  %s51_s10 = sadd.s32 1, %s1154_s26 }
  0x10   : > { %p44_p0 = scmp.ge.s32.totalorder %s42_s9, 2  ;;  %p58_p1 = scmp.ne.s32.totalorder %s1154_s26, %s1150_s25 }
  0x11   : > { %p59_p2 = scmp.eq.s32.totalorder %s1166_s29, 0  ;;  %p64_p3 = scmp.ne.s32.totalorder %s1150_s25, %s1146_s24 }
  0x12   : > { %s1565_s9 = smov (%p44_p0, %s42_s9), 0  ;;  %p65_p5 = scmp.eq.s32.totalorder %s871_s30, 0 }
  0x13   : > { %1534 = sst [smem:[#allocation14_spill]] %s1565_s9  ;;  %p1255_p4 = por %p59_p2, %p58_p1 }
  0x14   : > { %s46_s12 = ssub.s32 %s1162_s28, %s1565_s9  ;;  %p146_p6 = scmp.eq.s32.totalorder %s871_s30, 1 }
  0x15   : > { %p49_p7 = scmp.eq.s32.totalorder %s46_s12, 0  ;;  %p1261_p8 = por %p65_p5, %p64_p3 }
  0x16   : > { %p1265_p9 = por %p146_p6, %p58_p1  ;;  %p152_p10 = scmp.eq.s32.totalorder %s872_s8, 1 }
  0x17   : > { %s1536_s13 = scalar_select %p1261_p8, 1, 0 }
  0x18   : > { %s1537_s14 = scalar_select %p1265_p9, 1, 0 }
  0x19   : > { %s1270_s15 = scalar_select %p49_p7, %s1154_s26, %s51_s10  }
  0x1a   : > { %p1272_p11 = por %p152_p10, %p64_p3  ;;  %p931_p13 = scmp.lt.s32.totalorder %s1166_s29, 2 }
  0x1b   : > { %s1279_s17 = sand.u32 1, %s1154_s26   ;;  %s1526_s19 = sshll.u32 %s1162_s28, 7 }
  0x1c   : > { %s1538_s16 = scalar_select %p1272_p11, 1, 0 }
  0x1d   : > { %s1525_s18 = sshll.u32 %s1279_s17, 3  ;;  %s1539_s0 = sld [smem:[#allocation15_spill]] }
  0x1e   : > { %s288_s23 = scalar_lea.vmem [#allocation2], %s1525_s18  ;;  %p1296_p0 = pnand %p931_p13, %p1255_p4 }
  0x1f   : > { %s298_s30 = sshll.u32 %s288_s23, 4  ;;  %s285_s10 = scalar_lea.sflag [#allocation3], %s1279_s17  ;;  %s1292_s30 = int_to_ptr.vmem [resolvable:$true] %s298_s30 }
  0x20   : > { %p990_p5 = pneg %p1296_p0 }
  0x23   : > { %s1288_s22 = scalar_lea.hbm %s1539_s0, %s1526_s19  ;;  %s993_s11 = scalar_lea.hbm %s1539_s0, 256 }
  0x24   : > { %s988_s12 = scalar_lea.hbm %s1288_s22, 128  ;;  %p994_p4 = scmp.lt.u32.totalorder %s1288_s22, %s1539_s0 }
  0x25   : > { %p989_p3 = scmp.ne.s32.totalorder %s1288_s22, %s988_s12  ;;  %p995_p10 = scmp.lt.u32.totalorder %s993_s11, %s988_s12 }
  0x26   : > { %p997_p12 = scmp.lt.u32.totalorder %s988_s12, %s1288_s22 }
  0x27   : > { %p991_p6 = pnand %p990_p5, %p989_p3  ;;  %p996_p13 = por %p995_p10, %p994_p4 }
  0x29   : > { %p992_p7 = pneg %p991_p6  ;;  %p998_p1 = por %p997_p12, %p996_p13 }
  0x2b   : > { %p999_p2 = pnand %p998_p1, %p992_p7 }
  0x2d   : > { %1002 = shalt.err (!%p999_p2)
}
  0x2e   : > { %s1003_s19 = scalar_lea.vmem %s1292_s30, 128  ;;  %s1168_s20 = smov [#allocation2]  }
  0x2f   : > { %p1004_p3 = scmp.ne.s32.totalorder %s1292_s30, %s1003_s19  ;;  %s1008_s21 = sshll.u32 %s1168_s20, 4  ;;  %s1009_s21 = int_to_ptr.vmem [resolvable:$false] %s1008_s21 }
  0x30   : > { %s1010_s18 = scalar_lea.vmem %s1009_s21, 256  ;;  %p1011_p9 = scmp.lt.s32.totalorder %s1292_s30, %s1009_s21 }
  0x31   : > { %p1006_p6 = pnand %p1004_p3, %p990_p5  ;;  %p1012_p4 = scmp.lt.s32.totalorder %s1010_s18, %s1003_s19 }
  0x33   : > { %p1007_p11 = pneg %p1006_p6  ;;  %p1013_p10 = por %p1012_p4, %p1011_p9 }
  0x35   : > { %p1014_p12 = pnand %p1013_p10, %p1007_p11 }
  0x37   : > { %1017 = shalt.err (!%p1014_p12)
}
  0x38   : > { %920 = dma.hbm_to_vmem [thread:$0]  (!%p1296_p0), %s1288_s22, 128, %s1292_s30, %s285_s10  }
  0x39   : > { %p1541_p1 = scmp.lt.s32.totalorder %s1166_s29, 3  ;;  %p1542_p2 = scmp.ge.s32.totalorder %s1166_s29, 1 }
  0x3a   : > { %s1544_s19 = sshll.u32 %s1162_s28, 7  ;;  %s1545_s1 = sld [smem:[#allocation16_spill]] }
  0x3b   : > { %p1332_p7 = pnand %p1542_p2, %p1541_p1  ;;  %s1546_s21 = sshll.u32 %s1279_s17, 3 }
  0x3c   : > { %s309_s18 = scalar_lea.vmem [#allocation5], %s1546_s21  ;;  %s306_s22 = scalar_lea.sflag [#allocation6], %s1279_s17 }
  0x3d   : > { %s1543_s12 = scalar_select %p1332_p7, 1, 0 }
  0x3e   : > { %s319_s0 = sshll.u32 %s309_s18, 4  ;;  %s320_s0 = int_to_ptr.vmem [resolvable:$true] %s319_s0 }
  0x40   : > { %s1341_s20 = scalar_lea.hbm %s1545_s1, %s1544_s19  ;;  %s1023_s19 = scalar_lea.hbm %s1545_s1, 256 }
  0x41   : > { %s1018_s30 = scalar_lea.hbm %s1341_s20, 128  ;;  %p1024_p3 = scmp.lt.u32.totalorder %s1341_s20, %s1545_s1 }
  0x42   : > { %p1019_p9 = scmp.ne.s32.totalorder %s1341_s20, %s1018_s30  ;;  %p1025_p6 = scmp.lt.u32.totalorder %s1023_s19, %s1018_s30 }
  0x43   : > { %p1027_p10 = scmp.lt.u32.totalorder %s1018_s30, %s1341_s20 }
  0x44   : > { %p1021_p11 = pnand %p1019_p9, %p990_p5  ;;  %p1026_p4 = por %p1025_p6, %p1024_p3 }
  0x46   : > { %p1022_p13 = pneg %p1021_p11  ;;  %p1028_p12 = por %p1027_p10, %p1026_p4 }
  0x48   : > { %p1029_p1 = pnand %p1028_p12, %p1022_p13 }
  0x4a   : > { %1032 = shalt.err (!%p1029_p1)
}
  0x4b   : > { %s1033_s17 = scalar_lea.vmem %s320_s0, 128  ;;  %s1169_s21 = smov [#allocation5]  }
  0x4c   : > { %p1034_p2 = scmp.ne.s32.totalorder %s320_s0, %s1033_s17  ;;  %s1038_s9 = sshll.u32 %s1169_s21, 4  ;;  %s1039_s9 = int_to_ptr.vmem [resolvable:$false] %s1038_s9 }
  0x4d   : > { %s1040_s18 = scalar_lea.vmem %s1039_s9, 256  ;;  %p1041_p8 = scmp.lt.s32.totalorder %s320_s0, %s1039_s9 }
  0x4e   : > { %p1036_p9 = pnand %p1034_p2, %p990_p5  ;;  %p1042_p7 = scmp.lt.s32.totalorder %s1040_s18, %s1033_s17 }
  0x50   : > { %p1037_p11 = pneg %p1036_p9  ;;  %p1043_p3 = por %p1042_p7, %p1041_p8 }
  0x52   : > { %p1044_p6 = pnand %p1043_p3, %p1037_p11 }
  0x54   : > { %1047 = shalt.err (!%p1044_p6)
}
  0x55   : > { %923 = dma.hbm_to_vmem [thread:$0]  (!%p1296_p0), %s1341_s20, 128, %s320_s0, %s306_s22  }
  0x56   : > { %p1547_p13 = scmp.ne.s32.totalorder %s1543_s12, 0 }
  0x57   : > { %s1368_s30 = sand.u32 (!%p1547_p13), 1, %s1150_s25   ;;  %p1548_p8 = scmp.ne.s32.totalorder (!%p1547_p13), %s1536_s13, 0 }
  0x58   : > { %340 = sbr.rel (%p1547_p13) target bundleno = 351 (0x15f), region = 32  ;;  %s1371_s10 = sshll.u32 (!%p1547_p13), %s1368_s30, 3 }
  0x59   : > { %s343_s19 = scalar_lea.sflag (!%p1547_p13), [#allocation3], %s1368_s30  ;;  %s346_s11 = scalar_lea.vmem (!%p1547_p13), [#allocation2], %s1371_s10 }
  0x5f   : > { %1129 = dma.done.wait (%p1548_p8), %s343_s19, 128  }
  0x60   : > { %1131 = vsyncadd (%p1548_p8), %s343_s19, 4294967168  ;;  %s352_s0 = scalar_lea.sflag [#allocation6], %s1368_s30  ;;  %s355_s8 = scalar_lea.vmem [#allocation5], %s1371_s10 }
  0x61   : > { %1133 = dma.done.wait (%p1548_p8), %s352_s0, 128  }
  0x62   : > { %1135 = vsyncadd (%p1548_p8), %s352_s0, 4294967168  ;;  %p425_p0 = scmp.lt.s32.totalorder %s1158_s27, 1  ;;  %v459_v0 = vlaneseq  ;;  %s1549_s2 = sld [smem:[#allocation17_spill]]  ;;  %v454_v4 = vld [vmem:[%s355_s8] sm:$0xff]  ;;  %v453_v6 = vld [vmem:[%s346_s11] sm:$0xff]  ;;  %v1170_v8 = vmov 0  }
  0x63   : > { %vm457_vm1 = vcmp.ne.f32.partialorder %v454_v4, 255.0  ;;  %v549_v7 = vmul.f32 2.0, %v454_v4  ;;  %v477_v11 = vand.u32 2147483647, %v453_v6  ;;  %vm496_vm2 = vcmask 1043456   ;;  %s901_s13 = sshll.u32 %s1158_s27, 7 }
  0x64   : > { %s1387_s12 = scalar_select %p425_p0, %s1158_s27, 1  ;;  %v460_v1 = vshrl.u32 %v459_v0, 7  ;;  %v469_v10 = vsel %vm457_vm1, 1, %v1170_v8  ;;  %v531_v16 = vcombine.high %v454_v4, %v454_v4  ;;  %v474_v36 = vmax.f32 %v453_v6, 0.0 }
  0x65   : > { %v470_v14 = vcombine.high %v469_v10, %v469_v10  ;;  %v889_v15 = vadd.f32 -1.0, %v549_v7  ;;  %v478_v17 = vsub.f32 0.0, %v477_v11  ;;  %v475_v37 = vmul.f32 %v454_v4, %v453_v6  ;;  %s390_s21 = scalar_lea.vmem [#allocation7], %s1371_s10  ;;  %s1530_s18 = scalar_lea.vmem [#allocation8], %s1371_s10 }
  0x66   : > { %s886_s20 = sshll.u32 %s1387_s12, 1  ;;  %v461_v2 = vsub.s32 0, %v460_v1  ;;  %v465_v3 = vsub.s32 1, %v460_v1  ;;  %v1171_v47 = vmov 0.0   ;;  %s608_s9 = sshll.u32 %s390_s21, 4  ;;  %s609_s9 = int_to_ptr.vmem [resolvable:$true] %s608_s9 }
  0x67   : > { %vm471_vm5 = vcmp.ne.s32.totalorder %v470_v14, 0  ;;  %v551_v18 = vmul.f32 %v889_v15, %v453_v6  ;;  %v479_v20 = vmul.f32 1.442695, %v478_v17  ;;  %v476_v41 = vsub.f32 %v474_v36, %v475_v37  ;;  %s1435_s0 = scalar_lea.hbm %s1520_s3, %s901_s13  ;;  %s569_s8 = scalar_lea.sflag [#allocation4], %s1368_s30 }
  0x68   : > { %s431_s17 = scalar_lea.vmem %s1549_s2, %s886_s20  ;;  %s1048_s20 = scalar_lea.vmem %s609_s9, 128 }
  0x69   : > { %v455_v5 = vld [vmem:[%s431_s17] sm:$0x3]  ;;  %v890_v23 = vadd.f32 -1.0, %v551_v18  ;;  %984 = vpow2.f32 %v479_v20  ;;  %p1049_p5 = scmp.ne.s32.totalorder %s609_s9, %s1048_s20  ;;  %p1554_p7 = scmp.ne.s32.totalorder %s1537_s14, 0 }
  0x6a   : > { %vm456_vm0 = vcmp.ne.f32.partialorder %v455_v5, 0.0  ;;  %s1172_s22 = smov [#allocation7]  }
  0x6b   : > { %v458_v9 = vsel %vm456_vm0, 1, %v1170_v8  ;;  %v554_v28 = vcombine.high %v890_v23, %v890_v23  ;;  %p1050_p4 = pnand %p1049_p5, %p1554_p7  ;;  %s1052_s23 = sshll.u32 %s1172_s22, 4  ;;  %s1053_s23 = int_to_ptr.vmem [resolvable:$false] %s1052_s23 }
  0x6c   : > { %v462_v12 = vrot.slane %v458_v9, %v461_v2  ;;  %v466_v13 = vrot.slane %v458_v9, %v465_v3  ;;  %s1054_s17 = scalar_lea.vmem %s1053_s23, 256  ;;  %p1055_p12 = scmp.lt.s32.totalorder %s609_s9, %s1053_s23 }
  0x6d   : > { %p1051_p10 = pneg %p1050_p4  ;;  %p1056_p1 = scmp.lt.s32.totalorder %s1054_s17, %s1048_s20 }
  0x6e   : > { %vm467_vm3 = vcmp.eq.s32.totalorder %v462_v12, 1  ;;  %vm468_vm4 = vcmp.eq.s32.totalorder %v466_v13, 1 }
  0x6f   : > { %vm1395_vm6 = vmand %vm467_vm3, %vm457_vm1  ;;  %p1057_p2 = por %p1056_p1, %p1055_p12 }
  0x70   : > { %vm1399_vm7 = vmand %vm468_vm4, %vm471_vm5  ;;  %v533_v22 = vsel %vm1395_vm6, %v454_v4, 0.0  ;;  %v556_v29 = vsel %vm1395_vm6, %v890_v23, 1e+09  ;;  %v887_v48 = vsel %vm1395_vm6, 1.0, %v1171_v47 }
  0x71   : > { %v534_v24 = vsel %vm1399_vm7, %v531_v16, 0.0  ;;  %v535_v25 = vsel %vm496_vm2, %v533_v22, 0.0  ;;  %v557_v31 = vsel %vm1399_vm7, %v554_v28, 1e+09  ;;  %v888_v49 = vsel %vm1399_vm7, 1.0, %v1171_v47  ;;  %p1058_p9 = pnand %p1057_p2, %p1051_p10 }
  0x72   : > { %v536_v26 = vsel %vm496_vm2, %v534_v24, 0.0  ;;  %v565_v27 = vcombine.low %v533_v22, %v534_v24  ;;  %v516_v53 = vsel %vm496_vm2, %v887_v48, 0.0  ;;  %v517_v54 = vsel %vm496_vm2, %v888_v49, 0.0 }
  0x73   : > { %v537_v30 = vadd.f32 %v536_v26, %v535_v25  ;;  %v985_v32 = vpop.eup %984  ;;  %v518_v56 = vadd.f32 %v517_v54, %v516_v53  ;;  %v560_v57 = vcombine.low %v556_v29, %v557_v31 }
  0x74   : > { %v481_v33 = vadd.f32 1.0, %v985_v32  ;;  %v484_v34 = vmul.f32 -0.5, %v985_v32  ;;  %v487_v38 = vand.u32 2147483647, %v985_v32  ;;  %567 = vst [vmem:[%s1530_s18] sm:$0xff] %v565_v27 }
  0x75   : > { %538 = vadd.xlane.f32.xlu1 %v537_v30  ;;  %562 = vst [vmem:[%s390_s21] sm:$0xff] %v560_v57 }
  0x76   : > { %986 = vlog2.f32 %v481_v33  ;;  %v485_v35 = vadd.f32 1.0, %v484_v34  ;;  %vm488_vm8 = vcmp.lt.f32.partialorder %v487_v38, 0.0004427343 }
  0x78   : > { %v486_v39 = vmul.f32 %v985_v32, %v485_v35 }
  0x80   : > { %v987_v40 = vpop.eup %986 }
  0x81   : > { %v483_v42 = vmul.f32 0.6931472, %v987_v40 }
  0x83   : > { %v489_v43 = vsel %vm488_vm8, %v486_v39, %v483_v42 }
  0x84   : > { %v490_v44 = vadd.f32 %v489_v43, %v476_v41 }
  0x86   : > { %v492_v45 = vcombine.high %v490_v44, %v490_v44  ;;  %v494_v46 = vsel %vm1395_vm6, %v490_v44, 0.0 }
  0x87   : > { %v497_v50 = vsel %vm496_vm2, %v494_v46, 0.0 }
  0x88   : > { %v495_v51 = vsel %vm1399_vm7, %v492_v45, 0.0 }
  0x89   : > { %v498_v52 = vsel %vm496_vm2, %v495_v51, 0.0 }
  0x8a   : > { %v499_v55 = vadd.f32 %v498_v52, %v497_v50 }
  0x8c   : > { %500 = vadd.xlane.f32.xlu0 %v499_v55 }
  0x90   : > { %519 = vadd.xlane.f32.xlu0 %v518_v56 }
  0x91   : > { %1061 = shalt.err (!%p1058_p9)
}
  0x92   : > { %s1062_s21 = scalar_lea.hbm %s1435_s0, 128  ;;  %s1066_s22 = scalar_lea.hbm %s1520_s3, 256 }
  0x93   : > { %p1063_p11 = scmp.ne.s32.totalorder %s1435_s0, %s1062_s21  ;;  %p1067_p13 = scmp.lt.u32.totalorder %s1435_s0, %s1520_s3 }
  0x94   : > { %p1068_p8 = scmp.lt.u32.totalorder %s1066_s22, %s1062_s21  ;;  %p1070_p5 = scmp.lt.u32.totalorder %s1062_s21, %s1435_s0 }
  0x95   : > { %p1064_p3 = pnand %p1063_p11, %p1554_p7 }
  0x96   : > { %p1069_p0 = por %p1068_p8, %p1067_p13 }
  0x97   : > { %p1065_p6 = pneg %p1064_p3 }
  0x98   : > { %p1071_p4 = por %p1070_p5, %p1069_p0 }
  0x9a   : > { %p1072_p10 = pnand %p1071_p4, %p1065_p6 }
  0x9c   : > { %1075 = shalt.err (!%p1072_p10)
}
  0x9d   : > { %913 = dma.vmem_to_hbm [thread:$0]  (%p1554_p7), %s609_s9, 128, %s1435_s0, %s569_s8  }
  0x9e   : > { %s1460_s18 = scalar_lea.hbm %s1521_s4, %s901_s13  ;;  %s1555_s19 = scalar_lea.vmem [#allocation8], %s1371_s10 }
  0x9f   : > { %s624_s11 = sshll.u32 %s1555_s19, 4  ;;  %s574_s21 = scalar_lea.sflag [#allocation9], %s1368_s30  ;;  %s625_s11 = int_to_ptr.vmem [resolvable:$true] %s624_s11 }
  0xa0   : > { %s1076_s22 = scalar_lea.vmem %s625_s11, 128  ;;  %s1173_s23 = smov [#allocation8]  }
  0xa1   : > { %p1077_p12 = scmp.ne.s32.totalorder %s625_s11, %s1076_s22  ;;  %s1080_s1 = sshll.u32 %s1173_s23, 4  ;;  %s1081_s1 = int_to_ptr.vmem [resolvable:$false] %s1080_s1 }
  0xa2   : > { %s1082_s2 = scalar_lea.vmem %s1081_s1, 256  ;;  %p1083_p9 = scmp.lt.s32.totalorder %s625_s11, %s1081_s1 }
  0xa3   : > { %p1078_p1 = pnand %p1077_p12, %p1554_p7  ;;  %p1084_p11 = scmp.lt.s32.totalorder %s1082_s2, %s1076_s22 }
  0xa5   : > { %p1079_p2 = pneg %p1078_p1  ;;  %p1085_p3 = por %p1084_p11, %p1083_p9 }
  0xa7   : > { %p1086_p6 = pnand %p1085_p3, %p1079_p2 }
  0xa9   : > { %1089 = shalt.err (!%p1086_p6)
}
  0xaa   : > { %s1090_s27 = scalar_lea.hbm %s1460_s18, 128  ;;  %s1094_s13 = scalar_lea.hbm %s1521_s4, 256 }
  0xab   : > { %p1091_p13 = scmp.ne.s32.totalorder %s1460_s18, %s1090_s27  ;;  %p1095_p5 = scmp.lt.u32.totalorder %s1460_s18, %s1521_s4 }
  0xac   : > { %p1096_p4 = scmp.lt.u32.totalorder %s1094_s13, %s1090_s27  ;;  %p1098_p12 = scmp.lt.u32.totalorder %s1090_s27, %s1460_s18 }
  0xad   : > { %p1092_p8 = pnand %p1091_p13, %p1554_p7 }
  0xae   : > { %p1097_p10 = por %p1096_p4, %p1095_p5 }
  0xaf   : > { %p1093_p0 = pneg %p1092_p8 }
  0xb0   : > { %p1099_p1 = por %p1098_p12, %p1097_p10 }
  0xb2   : > { %p1100_p2 = pnand %p1099_p1, %p1093_p0 }
  0xb4   : > { %1103 = shalt.err (!%p1100_p2)
}
  0xb5   : > { %914 = dma.vmem_to_hbm [thread:$0]  (%p1554_p7), %s625_s11, 128, %s1460_s18, %s574_s21   ;;  %vm510_vm9 = vcmask 0  }
  0xb6   : > { %s440_s0 = scalar_lea.vmem %s1522_s5, %s1387_s12  ;;  %s446_s18 = scalar_lea.vmem %s1523_s6, %s1387_s12 }
  0xb7   : > { %s452_s22 = scalar_lea.vmem %s1524_s7, %s1387_s12 }
 0x102   : > { %v539_v58 = vpop.xlane.xlu1 %538 }
 0x103   : > { %v540_v59 = vrot.slane %v539_v58, 4 }
 0x105   : > { %v541_v60 = vadd.f32 %v540_v59, %v539_v58 }
 0x107   : > { %v542_v0 = vrot.slane %v541_v60, 2 }
 0x109   : > { %v543_v6 = vadd.f32 %v542_v0, %v541_v60 }
 0x10b   : > { %v544_v11 = vrot.slane %v543_v6, 1 }
 0x10d   : > { %v545_v14 = vadd.f32 %v544_v11, %v543_v6 }
 0x119   : > { %v501_v61 = vpop.xlane.xlu0 %500 }
 0x11a   : > { %v502_v62 = vrot.slane %v501_v61, 4 }
 0x11c   : > { %v503_v63 = vadd.f32 %v502_v62, %v501_v61 }
 0x11d   : > { %v520_v1 = vpop.xlane.xlu0 %519 }
 0x11e   : > { %v504_v2 = vrot.slane %v503_v63, 2  ;;  %v521_v3 = vrot.slane %v520_v1, 4 }
 0x120   : > { %v522_v4 = vadd.f32 %v521_v3, %v520_v1  ;;  %v505_v5 = vadd.f32 %v504_v2, %v503_v63 }
 0x122   : > { %v523_v7 = vrot.slane %v522_v4, 2  ;;  %v506_v8 = vrot.slane %v505_v5, 1 }
 0x124   : > { %v524_v9 = vadd.f32 %v523_v7, %v522_v4  ;;  %v507_v10 = vadd.f32 %v506_v8, %v505_v5 }
 0x126   : > { %903 = vpush %v507_v10  ;;  %v525_v12 = vrot.slane %v524_v9, 1 }
 0x128   : > { %v526_v13 = vadd.f32 %v525_v12, %v524_v9 }
 0x12a   : > { %905 = vpush %v526_v13 }
 0x12b   : > { %907 = vpush %v545_v14 }
 0x157   : > { %s904_s8 = spop %903 }
 0x158   : > { %v509_v15 = vstv %s904_s8 }
 0x159   : > { %511 = vst.msk [vmem:[%s440_s0] sm:$0x1] %vm510_vm9, %v509_v15 }
 0x15b   : > { %s906_s19 = spop %905 }
 0x15c   : > { %v528_v16 = vstv %s906_s19  ;;  %s908_s23 = spop %907 }
 0x15d   : > { %529 = vst.msk [vmem:[%s446_s18] sm:$0x1] %vm510_vm9, %v528_v16  ;;  %v547_v17 = vstv %s908_s23 }
 0x15e   : > { %548 = vst.msk [vmem:[%s452_s22] sm:$0x1] %vm510_vm9, %v547_v17 }
 0x15f PF: > { %s645_s27 = sand.u32 1, %s1146_s24   ;;  %p1556_p7 = scmp.ne.s32.totalorder %s1538_s16, 0 }
 0x160   : > { %p1557_p9 = scmp.ge.s32.totalorder %s1166_s29, 2  ;;  %s646_s30 = scalar_lea.sflag [#allocation4], %s645_s27 }
 0x162   : > { %p925_p11 = pnand %p1557_p9, %p1556_p7 }
 0x164   : > { %1137 = dma.done.wait (!%p925_p11), %s646_s30, 128  }
 0x165   : > { %1139 = vsyncadd (!%p925_p11), %s646_s30, 4294967168  ;;  %s655_s10 = scalar_lea.sflag [#allocation9], %s645_s27 }
 0x166   : > { %1141 = dma.done.wait (!%p925_p11), %s655_s10, 128  }
 0x167   : > { %1143 = vsyncadd (!%p925_p11), %s655_s10, 4294967168  ;;  %s30_s29 = sadd.s32 1, %s1166_s29   ;;  %s1558_s12 = sld [smem:[#allocation14_spill]] }
 0x168   : > { %p27_p3 = scmp.ge.s32.totalorder %s30_s29, 4   ;;  %s1559_s24 = smov %s1150_s25 }
 0x169   : > { %s1560_s25 = smov %s1154_s26  ;;  %s1561_s26 = smov %s1270_s15 }
 0x16a   : > { %s1562_s27 = smov %s1162_s28  ;;  %29 = sbr.rel (!%p27_p3) target bundleno = 14 (0xe), region = 146 }
 0x16d   : > { %s1563_s28 = smov %s1558_s12 }
 0x171   :  { %687 = vsyncpa [#allocation3], 1 }
 0x172   :  { %689 = vsyncpa [#allocation3 + $0x1], 1 }
 0x173   :  { %690 = vsyncpa [#allocation6], 1 }
 0x174   :  { %692 = vsyncpa [#allocation6 + $0x1], 1 }
 0x175   :  { %693 = vsyncpa [#allocation4], 1 }
 0x176   :  { %695 = vsyncpa [#allocation4 + $0x1], 1 }
 0x177   :  { %696 = vsyncpa [#allocation9], 1 }
 0x178   :  { %698 = vsyncpa [#allocation9 + $0x1], 1 }

</bundles_post_ra>
